<compile_context>
chip_gen: v5e
topology: v5e:2x2
jax: 0.10.0
libtpu: 0.0.40
codegen_flags: <defaults>
</compile_context>

<pallas_src>
import math
import functools

import jax
import jax.numpy as jnp
from jax.experimental import pallas as pl
from jax.experimental.pallas import tpu as pltpu

EPS = 1e-7
MAX_EXP_ARG = 32.0                 # overflow guard for exp(theta) in f32
VMEM_LIMIT = 48 * 1024 * 1024      # safe on v5e/v6e (128 MiB) and v7x (64 MiB)


def _round_up(x, m):
    return ((x + m - 1) // m) * m


# ---------------------------------------------------------------------------
# Lorentz-manifold helpers (only called inside kernels).
# Transcendental budget: cosh+sinh share a single exp (+ approx reciprocal),
# sigmoid is a single tanh, divisions use the EUP approximate reciprocal.
# ---------------------------------------------------------------------------
def _rcp(x):
    return pl.reciprocal(x, approx=True)


def _time_col_mask(d):
    # (1, d) bool mask selecting the Lorentz "time" coordinate (feature 0).
    return jax.lax.broadcasted_iota(jnp.int32, (1, d), 1) == 0


def _time_of(x, t_mask):
    return jnp.sum(jnp.where(t_mask, x, 0.0), axis=-1, keepdims=True)


def _cosh_sinh(z):
    # One exp + one approx reciprocal for both cosh and sinh (z >= 0).
    z = jnp.minimum(z, MAX_EXP_ARG)
    e = jnp.exp(z)
    ei = _rcp(e)
    return 0.5 * (e + ei), 0.5 * (e - ei)


def _acosh(z):
    return jnp.log(z + jnp.sqrt(jnp.maximum(z * z - 1.0, 0.0)))


def _logmap0(x, x0, k, t_mask):
    # Log map at the origin; returns a tangent vector with zero time coordinate.
    sqrt_k = math.sqrt(k)
    xs_sq = jnp.sum(x * x, axis=-1, keepdims=True) - x0 * x0       # spatial norm^2
    xs_norm = jnp.sqrt(jnp.maximum(xs_sq, EPS))
    dist = sqrt_k * _acosh(jnp.maximum(x0 * (1.0 / sqrt_k), 1.0))
    return jnp.where(t_mask, 0.0, (dist * _rcp(xs_norm)) * x)


def _expmap0(u, k, t_mask):
    # Exp map at the origin of a tangent vector with zero time coordinate.
    # Returns (point, time_coordinate).
    sqrt_k = math.sqrt(k)
    un = jnp.sqrt(jnp.maximum(jnp.sum(u * u, axis=-1, keepdims=True), EPS))
    ch, sh = _cosh_sinh(un * (1.0 / sqrt_k))
    time = sqrt_k * ch
    return jnp.where(t_mask, time, (sqrt_k * sh * _rcp(un)) * u), time


def _transp0_expmap(y, y0, v, k, t_mask):
    # Parallel-transport tangent v (zero time coord) from the origin to y,
    # then exp-map it at y.  Returns (point, time_coordinate).
    sqrt_k = math.sqrt(k)
    # Minkowski <y, v> with v_time = 0 reduces to a plain dot product.
    inner_yv = jnp.sum(y * v, axis=-1, keepdims=True)
    coef = inner_yv * _rcp(k + sqrt_k * y0)
    u = v + coef * (y + jnp.where(t_mask, sqrt_k, 0.0))
    u0 = coef * (y0 + sqrt_k)
    u_sq = jnp.sum(u * u, axis=-1, keepdims=True) - 2.0 * u0 * u0  # Minkowski norm^2
    un = jnp.sqrt(jnp.maximum(u_sq, EPS))
    ch, sh = _cosh_sinh(un * (1.0 / sqrt_k))
    fac = sqrt_k * sh * _rcp(un)
    return ch * y + fac * u, ch * y0 + fac * u0


# ---------------------------------------------------------------------------
# Kernel 1: node-wise pass over flattened (batch*node) rows.
# ---------------------------------------------------------------------------
def _row_kernel(x_ref, wlin_ref, wpack_ref, vec_ref,
                xl_ref, al_ref, ar_ref, msg_ref,
                *, k_in, scale):
    dp = xl_ref.shape[-1]
    t_in = _time_col_mask(x_ref.shape[-1])
    t_out = _time_col_mask(dp)

    x = x_ref[...]                                    # (TM, Din_p) f32
    vecs = vec_ref[...]                               # (4, Dout_p) f32
    b_hyp = vecs[0:1, :]
    b_m1 = vecs[1:2, :]
    b_m2 = vecs[2:3, :]
    b_a1 = vecs[3:4, :]

    # ---------------- HypLinear ----------------
    x0 = _time_of(x, t_in)
    u = _logmap0(x, x0, k_in, t_in)
    h = jnp.dot(u.astype(jnp.bfloat16), wlin_ref[...],
                preferred_element_type=jnp.float32) * scale
    h = jnp.where(t_out, 0.0, h)                      # proj_tan0 (dropout p=0 -> identity)
    y, y0 = _expmap0(h, k_in, t_out)
    bias = jnp.where(t_out, 0.0, b_hyp)               # proj_tan0(bias)
    xl, xl0 = _transp0_expmap(y, y0, bias, k_in, t_out)
    xl_ref[...] = xl

    # ---------------- node-wise part of HypAgg ----------------
    ut = _logmap0(xl, xl0, k_in, t_out)               # tangent at the origin
    ut_b = ut.astype(jnp.bfloat16)
    # DenseAtt left / right projections (right carries the DenseAtt hidden bias)
    al_ref[...] = jnp.dot(ut_b, wpack_ref[0, :, :], preferred_element_type=jnp.float32)
    ar_ref[...] = jnp.dot(ut_b, wpack_ref[1, :, :],
                          preferred_element_type=jnp.float32) + b_a1
    # msg_net
    m1 = jnp.maximum(jnp.dot(ut_b, wpack_ref[2, :, :],
                             preferred_element_type=jnp.float32) + b_m1, 0.0)
    msg_ref[...] = jnp.dot(m1.astype(jnp.bfloat16), wpack_ref[3, :, :],
                           preferred_element_type=jnp.float32) + b_m2


# ---------------------------------------------------------------------------
# Kernel 2: per-batch DenseAtt attention + aggregation, j-tiled; finalize with
# out_net / transp0 / expmap / HypNorm / HypAct at the last j-tile.
# ---------------------------------------------------------------------------
def _attn_kernel(al_ref, ar_ref, msg_ref, xl_ref, adj_ref,
                 wpack_ref, vec_ref, out_ref, agg_ref,
                 *, k_in, k_out, ba2, dout_real, ln_eps):
    j = pl.program_id(1)

    @pl.when(j == 0)
    def _init():
        agg_ref[...] = jnp.zeros_like(agg_ref)

    vecs = vec_ref[...]                               # (6, Dout_p) f32
    w_adj = vecs[0:1, :]
    w_a2 = vecs[1:2, :]

    a_l = al_ref[...]                                 # (N, Dp)
    a_rb = ar_ref[...]                                # (TJ, Dp) (hidden bias folded in)
    adj = adj_ref[...]                                # (N, TJ)
    msg = msg_ref[...]                                # (TJ, Dp)

    # DenseAtt hidden for this j-tile only: (N, TJ, Dp) -- never the full (N, N, Dp).
    h1 = a_l[:, None, :] + a_rb[None, :, :] + adj[:, :, None] * w_adj[None, :, :]
    h1 = jnp.maximum(h1, 0.0)
    logit = jnp.sum(h1 * w_a2[None, :, :], axis=-1) + ba2         # (N, TJ)
    att = 0.5 * (1.0 + jnp.tanh(0.5 * logit))                     # sigmoid, single EUP op

    agg_ref[...] += jnp.dot(att.astype(jnp.bfloat16), msg.astype(jnp.bfloat16),
                            preferred_element_type=jnp.float32)

    @pl.when(j == pl.num_programs(1) - 1)
    def _finalize():
        dp = out_ref.shape[-1]
        t_out = _time_col_mask(dp)
        b_o1 = vecs[2:3, :]
        b_o2 = vecs[3:4, :]
        gamma = vecs[4:5, :]
        beta = vecs[5:6, :]

        xl = xl_ref[...]
        xl0 = _time_of(xl, t_out)
        agg = agg_ref[...]

        # out_net
        o1 = jnp.maximum(jnp.dot(agg.astype(jnp.bfloat16), wpack_ref[0, :, :],
                                 preferred_element_type=jnp.float32) + b_o1, 0.0)
        s = jnp.dot(o1.astype(jnp.bfloat16), wpack_ref[1, :, :],
                    preferred_element_type=jnp.float32) + b_o2

        # proj_tan0 -> transp0 -> expmap at xl
        s = jnp.where(t_out, 0.0, s)
        xa, xa0 = _transp0_expmap(xl, xl0, s, k_in, t_out)

        # HypNorm: LayerNorm over the *real* spatial coordinates only
        hn = _logmap0(xa, xa0, k_in, t_out)
        col = jax.lax.broadcasted_iota(jnp.int32, (1, dp), 1)
        sp_mask = jnp.logical_and(col >= 1, col < dout_real)
        inv_cnt = 1.0 / float(dout_real - 1)
        mean = jnp.sum(jnp.where(sp_mask, hn, 0.0), axis=-1, keepdims=True) * inv_cnt
        diff = jnp.where(sp_mask, hn - mean, 0.0)
        var = jnp.sum(diff * diff, axis=-1, keepdims=True) * inv_cnt
        normed = diff * jax.lax.rsqrt(var + ln_eps) * gamma + beta
        hn = jnp.where(sp_mask, normed, hn)           # time + padded columns untouched
        xn, xn0 = _expmap0(hn, k_in, t_out)

        # HypAct: ReLU in tangent space, re-map on the output manifold
        ua = jnp.maximum(_logmap0(xn, xn0, k_in, t_out), 0.0)
        ua = jnp.where(t_out, 0.0, ua)                # proj_tan0
        out, _ = _expmap0(ua, k_out, t_out)
        out_ref[...] = out


# ---------------------------------------------------------------------------
# Parameter init (deterministic; shapes follow the module's __init__).
# Linear weights stored pre-transposed as (in, out); biases as (1, out).
# ---------------------------------------------------------------------------
def init_params(key, din, dout, edge_dim=1):
    keys = jax.random.split(key, 8)

    def linear(k, fan_in, fan_out, bias=True):
        bound = 1.0 / math.sqrt(fan_in)
        kw, kb = jax.random.split(k)
        w = jax.random.uniform(kw, (fan_in, fan_out), jnp.float32, -bound, bound)
        if not bias:
            return w
        b = jax.random.uniform(kb, (1, fan_out), jnp.float32, -bound, bound)
        return w, b

    wlin = linear(keys[0], din, dout, bias=False)             # HypLinear (no bias)
    bhyp = jnp.zeros((1, dout), jnp.float32)                  # reset_parameters -> 0

    # DenseAtt: Linear(2*dout + edge_dim, dout) -> ReLU -> Linear(dout, 1) -> Sigmoid
    wa1, ba1 = linear(keys[1], 2 * dout + edge_dim, dout)
    wa1l, wa1r, wa1adj = wa1[:dout], wa1[dout:2 * dout], wa1[2 * dout:]
    wa2_t, ba2 = linear(keys[2], dout, 1)
    wa2 = wa2_t.T                                             # (1, dout)

    # msg_net / out_net
    wm1, bm1 = linear(keys[3], dout + edge_dim - 1, dout)
    wm2, bm2 = linear(keys[4], dout, dout)
    wo1, bo1 = linear(keys[5], dout, dout)
    wo2, bo2 = linear(keys[6], dout, dout)

    # LayerNorm(dout - 1): weight=1, bias=0, stored padded to (1, dout) (slot 0 = time).
    # TODO(synk): if importing trained LayerNorm weights, shift them by one column.
    gamma = jnp.ones((1, dout), jnp.float32)
    beta = jnp.zeros((1, dout), jnp.float32)

    scale = math.sqrt(1.0 / dout) if dout > din else 1.0      # Lorentz learnable scale

    return dict(wlin=wlin, bhyp=bhyp, wa1l=wa1l, wa1r=wa1r, wa1adj=wa1adj,
                ba1=ba1, wa2=wa2, ba2=ba2, wm1=wm1, bm1=bm1, wm2=wm2, bm2=bm2,
                wo1=wo1, bo1=bo1, wo2=wo2, bo2=bo2, gamma=gamma, beta=beta,
                scale=scale)


def _pad_mat(w, rows, cols, dtype):
    return jnp.pad(w, ((0, rows - w.shape[0]), (0, cols - w.shape[1]))).astype(dtype)


def _pad_vec(v, cols):
    v = v.reshape(1, -1)
    return jnp.pad(v, ((0, 0), (0, cols - v.shape[-1]))).astype(jnp.float32)


# ---------------------------------------------------------------------------
# Wrapper: pad features to lane-dense 128 multiples, pack weights, run the two
# kernels, slice padding off.
# ---------------------------------------------------------------------------
def hyperbolic_graph_conv(x, adj, params, *, k_in=1.0, k_out=1.0):
    B, N, Din = x.shape
    Dout = params["wlin"].shape[1]
    Din_p = _round_up(Din, 128)
    Dout_p = _round_up(Dout, 128)

    # ---------------- row pass over flattened (B*N) rows ----------------
    R = B * N
    TM = min(128, _round_up(R, 8))
    R_pad = _round_up(R, TM)
    x_flat = jnp.pad(x.reshape(R, Din).astype(jnp.float32),
                     ((0, R_pad - R), (0, Din_p - Din)))

    # packed / padded weights: matmul operands in bf16, bias-like vectors in f32
    wlin = _pad_mat(params["wlin"], Din_p, Dout_p, jnp.bfloat16)
    wpack1 = jnp.stack([_pad_mat(params[n], Dout_p, Dout_p, jnp.bfloat16)
                        for n in ("wa1l", "wa1r", "wm1", "wm2")])
    vec1 = jnp.concatenate([_pad_vec(params[n], Dout_p)
                            for n in ("bhyp", "bm1", "bm2", "ba1")], axis=0)
    wpack2 = jnp.stack([_pad_mat(params[n], Dout_p, Dout_p, jnp.bfloat16)
                        for n in ("wo1", "wo2")])
    vec2 = jnp.concatenate([_pad_vec(params[n], Dout_p)
                            for n in ("wa1adj", "wa2", "bo1", "bo2", "gamma", "beta")],
                           axis=0)

    row_kernel = functools.partial(_row_kernel, k_in=k_in,
                                   scale=float(params["scale"]))
    row_out = jax.ShapeDtypeStruct((R_pad, Dout_p), jnp.float32)
    xl_f, al_f, ar_f, msg_f = pl.pallas_call(
        row_kernel,
        out_shape=(row_out,) * 4,
        grid=(R_pad // TM,),
        in_specs=[
            pl.BlockSpec((TM, Din_p), lambda i: (i, 0)),
            pl.BlockSpec((Din_p, Dout_p), lambda i: (0, 0)),
            pl.BlockSpec((4, Dout_p, Dout_p), lambda i: (0, 0, 0)),
            pl.BlockSpec((4, Dout_p), lambda i: (0, 0)),
        ],
        out_specs=[pl.BlockSpec((TM, Dout_p), lambda i: (i, 0)) for _ in range(4)],
        compiler_params=pltpu.CompilerParams(
            dimension_semantics=("parallel",),
            vmem_limit_bytes=VMEM_LIMIT),
    )(x_flat, wlin, wpack1, vec1)

    def per_batch(a):
        return a[:R].reshape(B, N, Dout_p)

    xl_b, al_b, ar_b, msg_b = map(per_batch, (xl_f, al_f, ar_f, msg_f))

    # ---------------- attention / aggregation pass ----------------
    TJ = N if N <= 128 else 128
    assert N % TJ == 0, "TODO(synk): pad/mask ragged node counts for N > 128"
    NJ = N // TJ

    attn_kernel = functools.partial(
        _attn_kernel, k_in=k_in, k_out=k_out,
        ba2=float(params["ba2"].reshape(())), dout_real=Dout, ln_eps=1e-5)

    out_p = pl.pallas_call(
        attn_kernel,
        out_shape=jax.ShapeDtypeStruct((B, N, Dout_p), jnp.float32),
        grid=(B, NJ),
        in_specs=[
            pl.BlockSpec((None, N, Dout_p), lambda b, j: (b, 0, 0)),    # a_l
            pl.BlockSpec((None, TJ, Dout_p), lambda b, j: (b, j, 0)),   # a_r (+bias)
            pl.BlockSpec((None, TJ, Dout_p), lambda b, j: (b, j, 0)),   # msg_j
            pl.BlockSpec((None, N, Dout_p), lambda b, j: (b, 0, 0)),    # xl
            pl.BlockSpec((None, N, TJ), lambda b, j: (b, 0, j)),        # adj j-tile
            pl.BlockSpec((2, Dout_p, Dout_p), lambda b, j: (0, 0, 0)),  # out_net weights
            pl.BlockSpec((6, Dout_p), lambda b, j: (0, 0)),             # vectors
        ],
        out_specs=pl.BlockSpec((None, N, Dout_p), lambda b, j: (b, 0, 0)),
        scratch_shapes=[pltpu.VMEM((N, Dout_p), jnp.float32)],
        compiler_params=pltpu.CompilerParams(
            dimension_semantics=("parallel", "arbitrary"),
            vmem_limit_bytes=VMEM_LIMIT),
    )(al_b, ar_b, msg_b, xl_b, adj.astype(jnp.float32), wpack2, vec2)

    return out_p[..., :Dout], adj     # module returns (node_features, adjacency_matrix)


if __name__ == "__main__":
    key = jax.random.PRNGKey(0)
    B, N, Din, Dout = 2, 8, 8, 16
    k_in = k_out = 1.0

    kx, kadj, kp = jax.random.split(key, 3)
    # valid Lorentz-manifold points: x0 = sqrt(k + ||x_space||^2)
    xs = 0.5 * jax.random.normal(kx, (B, N, Din - 1), jnp.float32)
    x0 = jnp.sqrt(k_in + jnp.sum(xs * xs, axis=-1, keepdims=True))
    x = jnp.concatenate([x0, xs], axis=-1)
    adj = (jax.random.uniform(kadj, (B, N, N)) > 0.5).astype(jnp.float32)

    params = init_params(kp, Din, Dout)

    feats, adj_out = hyperbolic_graph_conv(x, adj, params, k_in=k_in, k_out=k_out)
    feats = jax.block_until_ready(feats)

    assert feats.shape == (B, N, Dout)
    assert bool(jnp.all(jnp.isfinite(feats)))
    print("KERNEL_OK")
</pallas_src>

<mosaic_0001>
module attributes {stable_mosaic.version = 11 : i64} {
  func.func @_row_kernel(%arg0: i32, %arg1: memref<16x128xf32, #tpu.memory_space<vmem>>, %arg2: memref<128x128xbf16, #tpu.memory_space<vmem>>, %arg3: memref<4x128x128xbf16, #tpu.memory_space<vmem>>, %arg4: memref<4x128xf32, #tpu.memory_space<vmem>>, %arg5: memref<16x128xf32, #tpu.memory_space<vmem>>, %arg6: memref<16x128xf32, #tpu.memory_space<vmem>>, %arg7: memref<16x128xf32, #tpu.memory_space<vmem>>, %arg8: memref<16x128xf32, #tpu.memory_space<vmem>>) attributes {dimension_semantics = [#tpu.dimension_semantics<parallel>], iteration_bounds = array<i64: 1>, scalar_prefetch = 0 : i64, scratch_operands = 0 : i64, tpu.core_type = #tpu.core_type<tc>, window_params = [{transform_indices = @transform_0, window_bounds = array<i64: 16, 128>}, {pipeline_mode = #tpu.pipeline_mode<synchronous>, transform_indices = @transform_1, window_bounds = array<i64: 128, 128>}, {pipeline_mode = #tpu.pipeline_mode<synchronous>, transform_indices = @transform_2, window_bounds = array<i64: 4, 128, 128>}, {pipeline_mode = #tpu.pipeline_mode<synchronous>, transform_indices = @transform_3, window_bounds = array<i64: 4, 128>}, {transform_indices = @transform_4, window_bounds = array<i64: 16, 128>}, {transform_indices = @transform_5, window_bounds = array<i64: 16, 128>}, {transform_indices = @transform_6, window_bounds = array<i64: 16, 128>}, {transform_indices = @transform_7, window_bounds = array<i64: 16, 128>}]} {
    %0 = tpu.iota {dimensions = array<i32: 1>} : vector<1x128xi32>
    %c0_i32 = arith.constant 0 : i32
    %1 = vector.broadcast %c0_i32 : i32 to vector<1x128xi32>
    %2 = arith.cmpi eq, %0, %1 : vector<1x128xi32>
    %3 = tpu.iota {dimensions = array<i32: 1>} : vector<1x128xi32>
    %c0_i32_0 = arith.constant 0 : i32
    %4 = vector.broadcast %c0_i32_0 : i32 to vector<1x128xi32>
    %5 = arith.cmpi eq, %3, %4 : vector<1x128xi32>
    %c0 = arith.constant 0 : index
    %c0_1 = arith.constant 0 : index
    %6 = vector.load %arg1[%c0, %c0_1] : memref<16x128xf32, #tpu.memory_space<vmem>>, vector<16x128xf32>
    %c0_2 = arith.constant 0 : index
    %c0_3 = arith.constant 0 : index
    %7 = vector.load %arg4[%c0_2, %c0_3] : memref<4x128xf32, #tpu.memory_space<vmem>>, vector<4x128xf32>
    %8 = vector.extract_strided_slice %7 {offsets = [0, 0], sizes = [1, 128], strides = [1, 1]} : vector<4x128xf32> to vector<1x128xf32>
    %9 = vector.extract_strided_slice %7 {offsets = [1, 0], sizes = [1, 128], strides = [1, 1]} : vector<4x128xf32> to vector<1x128xf32>
    %10 = vector.extract_strided_slice %7 {offsets = [2, 0], sizes = [1, 128], strides = [1, 1]} : vector<4x128xf32> to vector<1x128xf32>
    %11 = vector.extract_strided_slice %7 {offsets = [3, 0], sizes = [1, 128], strides = [1, 1]} : vector<4x128xf32> to vector<1x128xf32>
    %cst = arith.constant 0.000000e+00 : f32
    %12 = vector.shape_cast %2 : vector<1x128xi1> to vector<1x128xi1>
    %13 = vector.broadcast %12 : vector<1x128xi1> to vector<16x128xi1>
    %14 = vector.broadcast %cst : f32 to vector<16x128xf32>
    %15 = arith.select %13, %6, %14 : vector<16x128xi1>, vector<16x128xf32>
    %cst_4 = arith.constant dense<0.000000e+00> : vector<16xf32>
    %16 = vector.multi_reduction <add>, %15, %cst_4 [1] : vector<16x128xf32> to vector<16xf32>
    %17 = vector.shape_cast %16 : vector<16xf32> to vector<16x1xf32>
    %18 = arith.mulf %6, %6 : vector<16x128xf32>
    %cst_5 = arith.constant dense<0.000000e+00> : vector<16xf32>
    %19 = vector.multi_reduction <add>, %18, %cst_5 [1] : vector<16x128xf32> to vector<16xf32>
    %20 = vector.shape_cast %19 : vector<16xf32> to vector<16x1xf32>
    %21 = arith.mulf %17, %17 : vector<16x1xf32>
    %22 = arith.subf %20, %21 : vector<16x1xf32>
    %cst_6 = arith.constant 1.000000e-07 : f32
    %23 = vector.broadcast %cst_6 : f32 to vector<16x1xf32>
    %24 = arith.maximumf %22, %23 : vector<16x1xf32>
    %25 = math.sqrt %24 : vector<16x1xf32>
    %cst_7 = arith.constant 1.000000e+00 : f32
    %26 = vector.broadcast %cst_7 : f32 to vector<16x1xf32>
    %27 = arith.mulf %17, %26 : vector<16x1xf32>
    %cst_8 = arith.constant 1.000000e+00 : f32
    %28 = vector.broadcast %cst_8 : f32 to vector<16x1xf32>
    %29 = arith.maximumf %27, %28 : vector<16x1xf32>
    %30 = arith.mulf %29, %29 : vector<16x1xf32>
    %cst_9 = arith.constant 1.000000e+00 : f32
    %31 = vector.broadcast %cst_9 : f32 to vector<16x1xf32>
    %32 = arith.subf %30, %31 : vector<16x1xf32>
    %cst_10 = arith.constant 0.000000e+00 : f32
    %33 = vector.broadcast %cst_10 : f32 to vector<16x1xf32>
    %34 = arith.maximumf %32, %33 : vector<16x1xf32>
    %35 = math.sqrt %34 : vector<16x1xf32>
    %36 = arith.addf %29, %35 : vector<16x1xf32>
    %37 = math.log %36 : vector<16x1xf32>
    %cst_11 = arith.constant 1.000000e+00 : f32
    %38 = vector.broadcast %cst_11 : f32 to vector<16x1xf32>
    %39 = arith.mulf %38, %37 : vector<16x1xf32>
    %40 = tpu.reciprocal %25 {approx = true} : vector<16x1xf32> -> vector<16x1xf32>
    %41 = arith.mulf %39, %40 : vector<16x1xf32>
    %42 = vector.broadcast %41 : vector<16x1xf32> to vector<16x128xf32>
    %43 = arith.mulf %42, %6 : vector<16x128xf32>
    %cst_12 = arith.constant 0.000000e+00 : f32
    %44 = vector.shape_cast %2 : vector<1x128xi1> to vector<1x128xi1>
    %45 = vector.broadcast %44 : vector<1x128xi1> to vector<16x128xi1>
    %46 = vector.broadcast %cst_12 : f32 to vector<16x128xf32>
    %47 = arith.select %45, %46, %43 : vector<16x128xi1>, vector<16x128xf32>
    %48 = arith.truncf %47 : vector<16x128xf32> to vector<16x128xbf16>
    %c0_13 = arith.constant 0 : index
    %c0_14 = arith.constant 0 : index
    %49 = vector.load %arg2[%c0_13, %c0_14] : memref<128x128xbf16, #tpu.memory_space<vmem>>, vector<128x128xbf16>
    %cst_15 = arith.constant dense<0.000000e+00> : vector<16x128xf32>
    %50 = tpu.matmul %48, %49, %cst_15 {dimension_numbers = #tpu.dot_dimension_numbers<[1], [0], [0], [1], [0, 0, 1, 1], [], []>} : vector<16x128xbf16>, vector<128x128xbf16>, vector<16x128xf32> -> vector<16x128xf32>
    %cst_16 = arith.constant 2.500000e-01 : f32
    %51 = vector.broadcast %cst_16 : f32 to vector<16x128xf32>
    %52 = arith.mulf %50, %51 : vector<16x128xf32>
    %cst_17 = arith.constant 0.000000e+00 : f32
    %53 = vector.shape_cast %5 : vector<1x128xi1> to vector<1x128xi1>
    %54 = vector.broadcast %53 : vector<1x128xi1> to vector<16x128xi1>
    %55 = vector.broadcast %cst_17 : f32 to vector<16x128xf32>
    %56 = arith.select %54, %55, %52 : vector<16x128xi1>, vector<16x128xf32>
    %57 = arith.mulf %56, %56 : vector<16x128xf32>
    %cst_18 = arith.constant dense<0.000000e+00> : vector<16xf32>
    %58 = vector.multi_reduction <add>, %57, %cst_18 [1] : vector<16x128xf32> to vector<16xf32>
    %59 = vector.shape_cast %58 : vector<16xf32> to vector<16x1xf32>
    %cst_19 = arith.constant 1.000000e-07 : f32
    %60 = vector.broadcast %cst_19 : f32 to vector<16x1xf32>
    %61 = arith.maximumf %59, %60 : vector<16x1xf32>
    %62 = math.sqrt %61 : vector<16x1xf32>
    %cst_20 = arith.constant 1.000000e+00 : f32
    %63 = vector.broadcast %cst_20 : f32 to vector<16x1xf32>
    %64 = arith.mulf %62, %63 : vector<16x1xf32>
    %cst_21 = arith.constant 3.200000e+01 : f32
    %65 = vector.broadcast %cst_21 : f32 to vector<16x1xf32>
    %66 = arith.minimumf %64, %65 : vector<16x1xf32>
    %67 = math.exp %66 : vector<16x1xf32>
    %68 = tpu.reciprocal %67 {approx = true} : vector<16x1xf32> -> vector<16x1xf32>
    %69 = arith.addf %67, %68 : vector<16x1xf32>
    %cst_22 = arith.constant 5.000000e-01 : f32
    %70 = vector.broadcast %cst_22 : f32 to vector<16x1xf32>
    %71 = arith.mulf %70, %69 : vector<16x1xf32>
    %72 = arith.subf %67, %68 : vector<16x1xf32>
    %cst_23 = arith.constant 5.000000e-01 : f32
    %73 = vector.broadcast %cst_23 : f32 to vector<16x1xf32>
    %74 = arith.mulf %73, %72 : vector<16x1xf32>
    %cst_24 = arith.constant 1.000000e+00 : f32
    %75 = vector.broadcast %cst_24 : f32 to vector<16x1xf32>
    %76 = arith.mulf %75, %71 : vector<16x1xf32>
    %cst_25 = arith.constant 1.000000e+00 : f32
    %77 = vector.broadcast %cst_25 : f32 to vector<16x1xf32>
    %78 = arith.mulf %77, %74 : vector<16x1xf32>
    %79 = tpu.reciprocal %62 {approx = true} : vector<16x1xf32> -> vector<16x1xf32>
    %80 = arith.mulf %78, %79 : vector<16x1xf32>
    %81 = vector.broadcast %80 : vector<16x1xf32> to vector<16x128xf32>
    %82 = arith.mulf %81, %56 : vector<16x128xf32>
    %83 = vector.shape_cast %5 : vector<1x128xi1> to vector<1x128xi1>
    %84 = vector.broadcast %83 : vector<1x128xi1> to vector<16x128xi1>
    %85 = vector.shape_cast %76 : vector<16x1xf32> to vector<16x1xf32>
    %86 = vector.broadcast %85 : vector<16x1xf32> to vector<16x128xf32>
    %87 = arith.select %84, %86, %82 : vector<16x128xi1>, vector<16x128xf32>
    %cst_26 = arith.constant 0.000000e+00 : f32
    %88 = vector.broadcast %cst_26 : f32 to vector<1x128xf32>
    %89 = arith.select %5, %88, %8 : vector<1x128xi1>, vector<1x128xf32>
    %90 = vector.broadcast %89 : vector<1x128xf32> to vector<16x128xf32>
    %91 = arith.mulf %87, %90 : vector<16x128xf32>
    %cst_27 = arith.constant dense<0.000000e+00> : vector<16xf32>
    %92 = vector.multi_reduction <add>, %91, %cst_27 [1] : vector<16x128xf32> to vector<16xf32>
    %93 = vector.shape_cast %92 : vector<16xf32> to vector<16x1xf32>
    %cst_28 = arith.constant 1.000000e+00 : f32
    %94 = vector.broadcast %cst_28 : f32 to vector<16x1xf32>
    %95 = arith.mulf %94, %76 : vector<16x1xf32>
    %cst_29 = arith.constant 1.000000e+00 : f32
    %96 = vector.broadcast %cst_29 : f32 to vector<16x1xf32>
    %97 = arith.addf %96, %95 : vector<16x1xf32>
    %98 = tpu.reciprocal %97 {approx = true} : vector<16x1xf32> -> vector<16x1xf32>
    %99 = arith.mulf %93, %98 : vector<16x1xf32>
    %cst_30 = arith.constant 1.000000e+00 : f32
    %cst_31 = arith.constant 0.000000e+00 : f32
    %100 = vector.broadcast %cst_30 : f32 to vector<1x128xf32>
    %101 = vector.broadcast %cst_31 : f32 to vector<1x128xf32>
    %102 = arith.select %5, %100, %101 : vector<1x128xi1>, vector<1x128xf32>
    %103 = vector.broadcast %102 : vector<1x128xf32> to vector<16x128xf32>
    %104 = arith.addf %87, %103 : vector<16x128xf32>
    %105 = vector.broadcast %99 : vector<16x1xf32> to vector<16x128xf32>
    %106 = arith.mulf %105, %104 : vector<16x128xf32>
    %107 = vector.broadcast %89 : vector<1x128xf32> to vector<16x128xf32>
    %108 = arith.addf %107, %106 : vector<16x128xf32>
    %cst_32 = arith.constant 1.000000e+00 : f32
    %109 = vector.broadcast %cst_32 : f32 to vector<16x1xf32>
    %110 = arith.addf %76, %109 : vector<16x1xf32>
    %111 = arith.mulf %99, %110 : vector<16x1xf32>
    %112 = arith.mulf %108, %108 : vector<16x128xf32>
    %cst_33 = arith.constant dense<0.000000e+00> : vector<16xf32>
    %113 = vector.multi_reduction <add>, %112, %cst_33 [1] : vector<16x128xf32> to vector<16xf32>
    %114 = vector.shape_cast %113 : vector<16xf32> to vector<16x1xf32>
    %cst_34 = arith.constant 2.000000e+00 : f32
    %115 = vector.broadcast %cst_34 : f32 to vector<16x1xf32>
    %116 = arith.mulf %115, %111 : vector<16x1xf32>
    %117 = arith.mulf %116, %111 : vector<16x1xf32>
    %118 = arith.subf %114, %117 : vector<16x1xf32>
    %cst_35 = arith.constant 1.000000e-07 : f32
    %119 = vector.broadcast %cst_35 : f32 to vector<16x1xf32>
    %120 = arith.maximumf %118, %119 : vector<16x1xf32>
    %121 = math.sqrt %120 : vector<16x1xf32>
    %cst_36 = arith.constant 1.000000e+00 : f32
    %122 = vector.broadcast %cst_36 : f32 to vector<16x1xf32>
    %123 = arith.mulf %121, %122 : vector<16x1xf32>
    %cst_37 = arith.constant 3.200000e+01 : f32
    %124 = vector.broadcast %cst_37 : f32 to vector<16x1xf32>
    %125 = arith.minimumf %123, %124 : vector<16x1xf32>
    %126 = math.exp %125 : vector<16x1xf32>
    %127 = tpu.reciprocal %126 {approx = true} : vector<16x1xf32> -> vector<16x1xf32>
    %128 = arith.addf %126, %127 : vector<16x1xf32>
    %cst_38 = arith.constant 5.000000e-01 : f32
    %129 = vector.broadcast %cst_38 : f32 to vector<16x1xf32>
    %130 = arith.mulf %129, %128 : vector<16x1xf32>
    %131 = arith.subf %126, %127 : vector<16x1xf32>
    %cst_39 = arith.constant 5.000000e-01 : f32
    %132 = vector.broadcast %cst_39 : f32 to vector<16x1xf32>
    %133 = arith.mulf %132, %131 : vector<16x1xf32>
    %cst_40 = arith.constant 1.000000e+00 : f32
    %134 = vector.broadcast %cst_40 : f32 to vector<16x1xf32>
    %135 = arith.mulf %134, %133 : vector<16x1xf32>
    %136 = tpu.reciprocal %121 {approx = true} : vector<16x1xf32> -> vector<16x1xf32>
    %137 = arith.mulf %135, %136 : vector<16x1xf32>
    %138 = vector.broadcast %130 : vector<16x1xf32> to vector<16x128xf32>
    %139 = arith.mulf %138, %87 : vector<16x128xf32>
    %140 = vector.broadcast %137 : vector<16x1xf32> to vector<16x128xf32>
    %141 = arith.mulf %140, %108 : vector<16x128xf32>
    %142 = arith.addf %139, %141 : vector<16x128xf32>
    %143 = arith.mulf %130, %76 : vector<16x1xf32>
    %144 = arith.mulf %137, %111 : vector<16x1xf32>
    %145 = arith.addf %143, %144 : vector<16x1xf32>
    %c0_41 = arith.constant 0 : index
    %c0_42 = arith.constant 0 : index
    %146 = vector.load %arg5[%c0_41, %c0_42] : memref<16x128xf32, #tpu.memory_space<vmem>>, vector<16x128xf32>
    tpu.vector_store %arg5[%c0_41, %c0_42], %142 {strides = array<i32>} : memref<16x128xf32, #tpu.memory_space<vmem>>, vector<16x128xf32>,
    %147 = arith.mulf %142, %142 : vector<16x128xf32>
    %cst_43 = arith.constant dense<0.000000e+00> : vector<16xf32>
    %148 = vector.multi_reduction <add>, %147, %cst_43 [1] : vector<16x128xf32> to vector<16xf32>
    %149 = vector.shape_cast %148 : vector<16xf32> to vector<16x1xf32>
    %150 = arith.mulf %145, %145 : vector<16x1xf32>
    %151 = arith.subf %149, %150 : vector<16x1xf32>
    %cst_44 = arith.constant 1.000000e-07 : f32
    %152 = vector.broadcast %cst_44 : f32 to vector<16x1xf32>
    %153 = arith.maximumf %151, %152 : vector<16x1xf32>
    %154 = math.sqrt %153 : vector<16x1xf32>
    %cst_45 = arith.constant 1.000000e+00 : f32
    %155 = vector.broadcast %cst_45 : f32 to vector<16x1xf32>
    %156 = arith.mulf %145, %155 : vector<16x1xf32>
    %cst_46 = arith.constant 1.000000e+00 : f32
    %157 = vector.broadcast %cst_46 : f32 to vector<16x1xf32>
    %158 = arith.maximumf %156, %157 : vector<16x1xf32>
    %159 = arith.mulf %158, %158 : vector<16x1xf32>
    %cst_47 = arith.constant 1.000000e+00 : f32
    %160 = vector.broadcast %cst_47 : f32 to vector<16x1xf32>
    %161 = arith.subf %159, %160 : vector<16x1xf32>
    %cst_48 = arith.constant 0.000000e+00 : f32
    %162 = vector.broadcast %cst_48 : f32 to vector<16x1xf32>
    %163 = arith.maximumf %161, %162 : vector<16x1xf32>
    %164 = math.sqrt %163 : vector<16x1xf32>
    %165 = arith.addf %158, %164 : vector<16x1xf32>
    %166 = math.log %165 : vector<16x1xf32>
    %cst_49 = arith.constant 1.000000e+00 : f32
    %167 = vector.broadcast %cst_49 : f32 to vector<16x1xf32>
    %168 = arith.mulf %167, %166 : vector<16x1xf32>
    %169 = tpu.reciprocal %154 {approx = true} : vector<16x1xf32> -> vector<16x1xf32>
    %170 = arith.mulf %168, %169 : vector<16x1xf32>
    %171 = vector.broadcast %170 : vector<16x1xf32> to vector<16x128xf32>
    %172 = arith.mulf %171, %142 : vector<16x128xf32>
    %cst_50 = arith.constant 0.000000e+00 : f32
    %173 = vector.shape_cast %5 : vector<1x128xi1> to vector<1x128xi1>
    %174 = vector.broadcast %173 : vector<1x128xi1> to vector<16x128xi1>
    %175 = vector.broadcast %cst_50 : f32 to vector<16x128xf32>
    %176 = arith.select %174, %175, %172 : vector<16x128xi1>, vector<16x128xf32>
    %177 = arith.truncf %176 : vector<16x128xf32> to vector<16x128xbf16>
    %c0_51 = arith.constant 0 : index
    %c0_52 = arith.constant 0 : index
    %c0_53 = arith.constant 0 : index
    %178 = vector.load %arg3[%c0_51, %c0_52, %c0_53] : memref<4x128x128xbf16, #tpu.memory_space<vmem>>, vector<1x128x128xbf16>
    %179 = vector.shape_cast %178 : vector<1x128x128xbf16> to vector<128x128xbf16>
    %cst_54 = arith.constant dense<0.000000e+00> : vector<16x128xf32>
    %180 = tpu.matmul %177, %179, %cst_54 {dimension_numbers = #tpu.dot_dimension_numbers<[1], [0], [0], [1], [0, 0, 1, 1], [], []>} : vector<16x128xbf16>, vector<128x128xbf16>, vector<16x128xf32> -> vector<16x128xf32>
    %c0_55 = arith.constant 0 : index
    %c0_56 = arith.constant 0 : index
    %181 = vector.load %arg6[%c0_55, %c0_56] : memref<16x128xf32, #tpu.memory_space<vmem>>, vector<16x128xf32>
    tpu.vector_store %arg6[%c0_55, %c0_56], %180 {strides = array<i32>} : memref<16x128xf32, #tpu.memory_space<vmem>>, vector<16x128xf32>,
    %c1 = arith.constant 1 : index
    %c0_57 = arith.constant 0 : index
    %c0_58 = arith.constant 0 : index
    %182 = vector.load %arg3[%c1, %c0_57, %c0_58] : memref<4x128x128xbf16, #tpu.memory_space<vmem>>, vector<1x128x128xbf16>
    %183 = vector.shape_cast %182 : vector<1x128x128xbf16> to vector<128x128xbf16>
    %cst_59 = arith.constant dense<0.000000e+00> : vector<16x128xf32>
    %184 = tpu.matmul %177, %183, %cst_59 {dimension_numbers = #tpu.dot_dimension_numbers<[1], [0], [0], [1], [0, 0, 1, 1], [], []>} : vector<16x128xbf16>, vector<128x128xbf16>, vector<16x128xf32> -> vector<16x128xf32>
    %185 = vector.broadcast %11 : vector<1x128xf32> to vector<16x128xf32>
    %186 = arith.addf %184, %185 : vector<16x128xf32>
    %c0_60 = arith.constant 0 : index
    %c0_61 = arith.constant 0 : index
    %187 = vector.load %arg7[%c0_60, %c0_61] : memref<16x128xf32, #tpu.memory_space<vmem>>, vector<16x128xf32>
    tpu.vector_store %arg7[%c0_60, %c0_61], %186 {strides = array<i32>} : memref<16x128xf32, #tpu.memory_space<vmem>>, vector<16x128xf32>,
    %c2 = arith.constant 2 : index
    %c0_62 = arith.constant 0 : index
    %c0_63 = arith.constant 0 : index
    %188 = vector.load %arg3[%c2, %c0_62, %c0_63] : memref<4x128x128xbf16, #tpu.memory_space<vmem>>, vector<1x128x128xbf16>
    %189 = vector.shape_cast %188 : vector<1x128x128xbf16> to vector<128x128xbf16>
    %cst_64 = arith.constant dense<0.000000e+00> : vector<16x128xf32>
    %190 = tpu.matmul %177, %189, %cst_64 {dimension_numbers = #tpu.dot_dimension_numbers<[1], [0], [0], [1], [0, 0, 1, 1], [], []>} : vector<16x128xbf16>, vector<128x128xbf16>, vector<16x128xf32> -> vector<16x128xf32>
    %191 = vector.broadcast %9 : vector<1x128xf32> to vector<16x128xf32>
    %192 = arith.addf %190, %191 : vector<16x128xf32>
    %cst_65 = arith.constant 0.000000e+00 : f32
    %193 = vector.broadcast %cst_65 : f32 to vector<16x128xf32>
    %194 = arith.maximumf %192, %193 : vector<16x128xf32>
    %195 = arith.truncf %194 : vector<16x128xf32> to vector<16x128xbf16>
    %c3 = arith.constant 3 : index
    %c0_66 = arith.constant 0 : index
    %c0_67 = arith.constant 0 : index
    %196 = vector.load %arg3[%c3, %c0_66, %c0_67] : memref<4x128x128xbf16, #tpu.memory_space<vmem>>, vector<1x128x128xbf16>
    %197 = vector.shape_cast %196 : vector<1x128x128xbf16> to vector<128x128xbf16>
    %cst_68 = arith.constant dense<0.000000e+00> : vector<16x128xf32>
    %198 = tpu.matmul %195, %197, %cst_68 {dimension_numbers = #tpu.dot_dimension_numbers<[1], [0], [0], [1], [0, 0, 1, 1], [], []>} : vector<16x128xbf16>, vector<128x128xbf16>, vector<16x128xf32> -> vector<16x128xf32>
    %199 = vector.broadcast %10 : vector<1x128xf32> to vector<16x128xf32>
    %200 = arith.addf %198, %199 : vector<16x128xf32>
    %c0_69 = arith.constant 0 : index
    %c0_70 = arith.constant 0 : index
    %201 = vector.load %arg8[%c0_69, %c0_70] : memref<16x128xf32, #tpu.memory_space<vmem>>, vector<16x128xf32>
    tpu.vector_store %arg8[%c0_69, %c0_70], %200 {strides = array<i32>} : memref<16x128xf32, #tpu.memory_space<vmem>>, vector<16x128xf32>,
    return
  }
  func.func @transform_0(%arg0: i32) -> (i32, i32) {
    %c0_i32 = arith.constant 0 : i32
    %c0_i32_0 = arith.constant 0 : i32
    return %arg0, %c0_i32 : i32, i32
  }
  func.func @transform_1(%arg0: i32) -> (i32, i32) {
    %c0_i32 = arith.constant 0 : i32
    %c0_i32_0 = arith.constant 0 : i32
    %c0_i32_1 = arith.constant 0 : i32
    return %c0_i32, %c0_i32_0 : i32, i32
  }
  func.func @transform_2(%arg0: i32) -> (i32, i32, i32) {
    %c0_i32 = arith.constant 0 : i32
    %c0_i32_0 = arith.constant 0 : i32
    %c0_i32_1 = arith.constant 0 : i32
    %c0_i32_2 = arith.constant 0 : i32
    return %c0_i32, %c0_i32_0, %c0_i32_1 : i32, i32, i32
  }
  func.func @transform_3(%arg0: i32) -> (i32, i32) {
    %c0_i32 = arith.constant 0 : i32
    %c0_i32_0 = arith.constant 0 : i32
    %c0_i32_1 = arith.constant 0 : i32
    return %c0_i32, %c0_i32_0 : i32, i32
  }
  func.func @transform_4(%arg0: i32) -> (i32, i32) {
    %c0_i32 = arith.constant 0 : i32
    %c0_i32_0 = arith.constant 0 : i32
    return %arg0, %c0_i32 : i32, i32
  }
  func.func @transform_5(%arg0: i32) -> (i32, i32) {
    %c0_i32 = arith.constant 0 : i32
    %c0_i32_0 = arith.constant 0 : i32
    return %arg0, %c0_i32 : i32, i32
  }
  func.func @transform_6(%arg0: i32) -> (i32, i32) {
    %c0_i32 = arith.constant 0 : i32
    %c0_i32_0 = arith.constant 0 : i32
    return %arg0, %c0_i32 : i32, i32
  }
  func.func @transform_7(%arg0: i32) -> (i32, i32) {
    %c0_i32 = arith.constant 0 : i32
    %c0_i32_0 = arith.constant 0 : i32
    return %arg0, %c0_i32 : i32, i32
  }
}

</mosaic_0001>

<bundles_post_ra>
// kernel: tpu_custom_call.1
= control target key start
LH: loop header
LB: loop body
LE: loop exit
PB: predicated region body
PF: predicated region fallthrough
CT: control target
= control target key end

     0   :  { %13 = vsyncpa [#allocation3], 0  ;;  %s1659_s0 = inlined_call_operand.hbm [shape: f32[16,128], index: 0, kind: input, shape index: {}]   ;;  %s1660_s1 = inlined_call_operand.hbm [shape: bf16[128,128], index: 1, kind: input, shape index: {}]   ;;  %s1661_s2 = inlined_call_operand.hbm [shape: bf16[4,128,128], index: 2, kind: input, shape index: {}]   ;;  %s1662_s3 = inlined_call_operand.hbm [shape: f32[4,128], index: 3, kind: input, shape index: {}]   ;;  %s1663_s4 = inlined_call_operand.hbm [shape: f32[16,128], index: 4, kind: output, shape index: {0}]   ;;  %s1664_s5 = inlined_call_operand.hbm [shape: f32[16,128], index: 5, kind: output, shape index: {1}]   ;;  %s1665_s6 = inlined_call_operand.hbm [shape: f32[16,128], index: 6, kind: output, shape index: {2}]   ;;  %s1666_s7 = inlined_call_operand.hbm [shape: f32[16,128], index: 7, kind: output, shape index: {3}]  }
   0x1   :  { %14 = vsyncpa [#allocation6], 0 }
   0x2   :  { %15 = vsyncpa [#allocation9], 0 }
   0x3   :  { %16 = vsyncpa [#allocation4], 0 }
   0x4   :  { %17 = vsyncpa [#allocation12], 0  ;;  %s36_s26 = sshll.u32 %s1660_s1, 4  ;;  %s37_s26 = int_to_ptr.hbm [resolvable:$true] %s36_s26 }
   0x5   :  { %18 = vsyncpa [#allocation15], 0  ;;  %s1408_s27 = smov [#allocation5]   ;;  %s23_s8 = sshll.u32 %s1659_s0, 4  ;;  %s24_s8 = int_to_ptr.hbm [resolvable:$true] %s23_s8 }
   0x6   :  { %s38_s28 = sshll.u32 %s1408_s27, 4  ;;  %s1409_s9 = smov 64   ;;  %s39_s28 = int_to_ptr.vmem [resolvable:$true] %s38_s28 }
   0x7   :  { %s1410_s10 = smov 4   ;;  %s1411_s11 = smov [#allocation2]  }
   0x8   :  { %44 = dma.hbm_to_vmem [thread:$0]  %s37_s26, 1024, %s39_s28, [#allocation6], %s1409_s9, %s1409_s9, %s1410_s10  }
   0x9   :  { %s25_s12 = sshll.u32 %s1411_s11, 4  ;;  %s1412_s13 = smov 128   ;;  %s26_s12 = int_to_ptr.vmem [resolvable:$true] %s25_s12 }
   0xa   :  { %s1413_s14 = smov 8   ;;  %s49_s16 = sshll.u32 %s1661_s2, 4  ;;  %s50_s16 = int_to_ptr.hbm [resolvable:$true] %s49_s16 }
   0xb   :  { %31 = dma.hbm_to_vmem [thread:$0]  %s24_s8, 256, %s26_s12, [#allocation3], %s1412_s13, %s1412_s13, %s1413_s14  }
   0xc   :  { %s1414_s17 = smov [#allocation7]   ;;  %s63_s20 = sshll.u32 %s1662_s3, 4  ;;  %s64_s20 = int_to_ptr.hbm [resolvable:$true] %s63_s20 }
   0xd   :  { %s51_s0 = sshll.u32 %s1414_s17, 4  ;;  %s1415_s21 = smov [#allocation8]   ;;  %s52_s0 = int_to_ptr.vmem [resolvable:$true] %s51_s0 }
   0xe   :  { %57 = dma.hbm_to_vmem [thread:$0]  %s50_s16, 4096, %s52_s0, [#allocation6], %s1409_s9, %s1409_s9, %s1410_s10  }
   0xf   :  { %s65_s22 = sshll.u32 %s1415_s21, 4  ;;  %s66_s22 = int_to_ptr.vmem [resolvable:$true] %s65_s22 }
  0x10   :  { %68 = dma.hbm_to_vmem [thread:$0]  %s64_s20, 64, %s66_s22, [#allocation9]  }
  0x11   :  { %1396 = dma.done.wait [#allocation3], 256  }
  0x12   :  { %1397 = vsyncadd [#allocation3], 4294967040 }
  0x13   :  { %1398 = dma.done.wait [#allocation6], 5120  }
  0x14   :  { %1399 = vsyncadd [#allocation6], 4294962176 }
  0x15   :  { %1400 = dma.done.wait [#allocation9], 64  }
  0x16   :  { %1401 = vsyncadd [#allocation9], 4294967232  ;;  %v85_v0 = vlaneseq  ;;  %v1479_v2 = vld [vmem:[#allocation2] sm:$0xff]  ;;  %v1486_v5 = vld [vmem:[#allocation2 + $0x8] sm:$0xff]  ;;  %s1417_s2 = smov [#allocation11]   ;;  %s844_s25 = sshll.u32 %s1664_s5, 4  ;;  %s845_s25 = int_to_ptr.hbm [resolvable:$true] %s844_s25 }
  0x17   :  { %v99_v4 = vmul.f32 %v1479_v2, %v1479_v2  ;;  %v100_v7 = vmul.f32 %v1486_v5, %v1486_v5  ;;  %v1090_v8 = vld [vmem:[#allocation5 + $0x38] sm:$0xff]  ;;  %v1089_v9 = vld [vmem:[#allocation5 + $0x30] sm:$0xff]  ;;  %v1088_v11 = vld [vmem:[#allocation5 + $0x28] sm:$0xff]  ;;  %s842_s3 = sshll.u32 %s1417_s2, 4  ;;  %s831_s28 = sshll.u32 %s1663_s4, 4  ;;  %s843_s3 = int_to_ptr.vmem [resolvable:$true] %s842_s3  ;;  %s832_s28 = int_to_ptr.hbm [resolvable:$true] %s831_s28 }
  0x18   :  { %v1476_v1 = vand.u32 127, %v85_v0  ;;  %246 = vmatpush.bf16.msra.mxu0 %v1090_v8  ;;  %v1087_v17 = vld [vmem:[#allocation5 + $0x20] sm:$0xff]  ;;  %v1086_v22 = vld [vmem:[#allocation5 + $0x18] sm:$0xff]  ;;  %v1085_v28 = vld [vmem:[#allocation5 + $0x10] sm:$0xff]  ;;  %s1418_s29 = smov [#allocation10]   ;;  %s1419_s8 = smov [#allocation13]  }
  0x19   :  { %101 = vadd.xlane.f32.xlu1 %v99_v4  ;;  %v1084_v36 = vld [vmem:[#allocation5 + $0x8] sm:$0xff]  ;;  %v1083_v39 = vld [vmem:[#allocation5] sm:$0xff]  ;;  %s829_s30 = sshll.u32 %s1418_s29, 4  ;;  %s855_s5 = sshll.u32 %s1419_s8, 4  ;;  %s830_s30 = int_to_ptr.vmem [resolvable:$true] %s829_s30  ;;  %s856_s5 = int_to_ptr.vmem [resolvable:$true] %s855_s5 }
  0x1a   :  { %vm87_vm0 = vcmp.eq.s32.totalorder %v1476_v1, 0  ;;  %s857_s11 = sshll.u32 %s1665_s6, 4  ;;  %s1420_s4 = smov [#allocation14]   ;;  %s858_s11 = int_to_ptr.hbm [resolvable:$true] %s857_s11 }
  0x1b   :  { %v93_v3 = vsel %vm87_vm0, %v1479_v2, 0.0  ;;  %v94_v6 = vsel %vm87_vm0, %v1486_v5, 0.0  ;;  %vm933_vm9 = vmneg %vm87_vm0  ;;  %s868_s12 = sshll.u32 %s1420_s4, 4  ;;  %s870_s16 = sshll.u32 %s1666_s7, 4  ;;  %s869_s12 = int_to_ptr.vmem [resolvable:$true] %s868_s12  ;;  %s871_s16 = int_to_ptr.hbm [resolvable:$true] %s870_s16 }
  0x1c   :  { %95 = vadd.xlane.f32.xlu0 %v93_v3  ;;  %247 = vmatpush.bf16.msra.mxu0 %v1089_v9  ;;  %vm1511_vm10 = vmpackc.low %vm933_vm9, %vm933_vm9 }
  0x20   :  { %248 = vmatpush.bf16.msra.mxu0 %v1088_v11 }
  0x21   :  { %103 = vadd.xlane.f32.xlu1 %v100_v7 }
  0x24   :  { %97 = vadd.xlane.f32.xlu0 %v94_v6  ;;  %249 = vmatpush.bf16.msra.mxu0 %v1087_v17 }
  0x28   :  { %250 = vmatpush.bf16.msra.mxu0 %v1086_v22 }
  0x2c   :  { %251 = vmatpush.bf16.msra.mxu0 %v1085_v28 }
  0x30   :  { %252 = vmatpush.bf16.msra.mxu0 %v1084_v36 }
  0x34   :  { %253 = vmatpush.bf16.msra.mxu0 %v1083_v39 }
  0x8c   :  { %v102_v14 = vpop.xlane.xlu1 %101 }
  0x8f   :  { %v96_v10 = vpop.xlane.xlu0 %95 }
  0x90   :  { %v105_v12 = vmul.f32 %v96_v10, %v96_v10  ;;  %v135_v13 = vmax.f32 %v96_v10, 1.0 }
  0x92   :  { %v137_v15 = vmul.f32 %v135_v13, %v135_v13  ;;  %v107_v16 = vsub.f32 %v102_v14, %v105_v12 }
  0x94   :  { %v899_v18 = vadd.f32 -1.0, %v137_v15  ;;  %v1493_v19 = vmax.f32 %v107_v16, 1e-07  ;;  %v104_v23 = vpop.xlane.xlu1 %103 }
  0x96   :  { %v141_v20 = vmax.f32 %v899_v18, 0.0  ;;  %1136 = vrsqrt.f32 %v1493_v19  ;;  %vm118_vm3 = vcmp.eq.f32.partialorder %v1493_v19, inf  ;;  %v121_v6 = vand.u32 2147483648, %v1493_v19 }
  0x97   :  { %v98_v21 = vpop.xlane.xlu0 %97  ;;  %vm120_vm5 = vcmp.eq.f32.partialorder %v1493_v19, 0.0 }
  0x98   :  { %1138 = vrsqrt.f32 %v141_v20  ;;  %v106_v24 = vmul.f32 %v98_v21, %v98_v21  ;;  %v1496_v25 = vmax.f32 %v98_v21, 1.0  ;;  %vm150_vm1 = vcmp.eq.f32.partialorder %v141_v20, inf }
  0x99   :  { %v153_v52 = vand.u32 2147483648, %v141_v20  ;;  %vm152_vm2 = vcmp.eq.f32.partialorder %v141_v20, 0.0 }
  0x9a   :  { %v138_v26 = vmul.f32 %v1496_v25, %v1496_v25  ;;  %v108_v27 = vsub.f32 %v104_v23, %v106_v24 }
  0x9c   :  { %v1137_v29 = vpop.eup %1136  ;;  %v900_v31 = vadd.f32 -1.0, %v138_v26  ;;  %v110_v32 = vmax.f32 %v108_v27, 1e-07 }
  0x9d   :  { %v112_v30 = vmul.f32 %v1137_v29, %v1493_v19 }
  0x9e   :  { %v1139_v33 = vpop.eup %1138  ;;  %v142_v35 = vmax.f32 %v900_v31, 0.0  ;;  %1140 = vrsqrt.f32 %v110_v32  ;;  %vm130_vm6 = vcmp.eq.f32.partialorder %v110_v32, inf  ;;  %v133_v12 = vand.u32 2147483648, %v110_v32 }
  0x9f   :  { %v144_v34 = vmul.f32 %v1139_v33, %v141_v20  ;;  %v113_v37 = vmul.f32 %v1137_v29, %v112_v30  ;;  %vm132_vm8 = vcmp.eq.f32.partialorder %v110_v32, 0.0 }
  0xa0   :  { %1142 = vrsqrt.f32 %v142_v35  ;;  %vm162_vm4 = vcmp.eq.f32.partialorder %v142_v35, inf  ;;  %v165_v7 = vand.u32 2147483648, %v142_v35  ;;  %vm164_vm7 = vcmp.eq.f32.partialorder %v142_v35, 0.0 }
  0xa1   :  { %v145_v38 = vmul.f32 %v1139_v33, %v144_v34  ;;  %v114_v40 = vmul.f32 0.5, %v113_v37 }
  0xa3   :  { %v146_v41 = vmul.f32 0.5, %v145_v38  ;;  %v115_v44 = vsub.f32 1.5, %v114_v40 }
  0xa4   :  { %v1141_v42 = vpop.eup %1140 }
  0xa5   :  { %v147_v43 = vsub.f32 1.5, %v146_v41  ;;  %v124_v45 = vmul.f32 %v1141_v42, %v110_v32  ;;  %v116_v51 = vmul.f32 %v1137_v29, %v115_v44 }
  0xa6   :  { %v1143_v46 = vpop.eup %1142 }
  0xa7   :  { %v148_v47 = vmul.f32 %v1139_v33, %v147_v43  ;;  %v156_v48 = vmul.f32 %v1143_v46, %v142_v35  ;;  %v125_v49 = vmul.f32 %v1141_v42, %v124_v45  ;;  %v117_v59 = vmul.f32 %v116_v51, %v1493_v19 }
  0xa9   :  { %v149_v50 = vmul.f32 %v148_v47, %v141_v20  ;;  %v157_v53 = vmul.f32 %v1143_v46, %v156_v48  ;;  %v126_v54 = vmul.f32 0.5, %v125_v49  ;;  %v119_v3 = vsel %vm118_vm3, %v1493_v19, %v117_v59 }
  0xaa   :  { %v122_v9 = vsel %vm120_vm5, %v121_v6, %v119_v3 }
  0xab   :  { %v151_v55 = vsel %vm150_vm1, %v141_v20, %v149_v50  ;;  %v158_v57 = vmul.f32 0.5, %v157_v53  ;;  %v127_v58 = vsub.f32 1.5, %v126_v54 }
  0xac   :  { %v154_v56 = vsel %vm152_vm2, %v153_v52, %v151_v55 }
  0xad   :  { %v167_v60 = vadd.f32 %v154_v56, %v135_v13  ;;  %v159_v61 = vsub.f32 1.5, %v158_v57  ;;  %v128_v62 = vmul.f32 %v1141_v42, %v127_v58 }
  0xaf   :  { %v160_v63 = vmul.f32 %v1143_v46, %v159_v61  ;;  %v129_v0 = vmul.f32 %v128_v62, %v110_v32  ;;  %1144 = vlog2.f32 %v167_v60 }
  0xb0   :  { %1146 = vrcp.f32 %v122_v9 }
  0xb1   :  { %v161_v4 = vmul.f32 %v160_v63, %v142_v35  ;;  %v131_v10 = vsel %vm130_vm6, %v110_v32, %v129_v0  ;;  %v1525_v63 = vld [vmem:[#allocation8] sm:$0xf] }
  0xb2   :  { %v134_v14 = vsel %vm132_vm8, %v133_v12, %v131_v10 }
  0xb3   :  { %v163_v8 = vsel %vm162_vm4, %v142_v35, %v161_v4 }
  0xb4   :  { %v166_v11 = vsel %vm164_vm7, %v165_v7, %v163_v8  ;;  %v320_v7 = vsel %vm87_vm0, 0.0, %v1525_v63 }
  0xb5   :  { %v168_v13 = vadd.f32 %v166_v11, %v1496_v25  ;;  %v1145_v15 = vpop.eup %1144  ;;  %v321_v10 = vperm.slane %v320_v7, 0  ;;  %v677_v25 = vperm.slane %v1525_v63, 1 }
  0xb6   :  { %v170_v16 = vmul.f32 0.6931472, %v1145_v15  ;;  %v1147_v17 = vpop.eup %1146 }
  0xb7   :  { %1148 = vlog2.f32 %v168_v13 }
  0xb8   :  { %1150 = vrcp.f32 %v134_v14  ;;  %v175_v19 = vmul.f32 %v1147_v17, %v170_v16 }
  0xba   :  { %v177_v23 = vmul.f32 %v175_v19, %v1479_v2 }
  0xbd   :  { %v1149_v18 = vpop.eup %1148 }
  0xbe   :  { %v172_v20 = vmul.f32 0.6931472, %v1149_v18  ;;  %v1151_v21 = vpop.eup %1150 }
  0xc0   :  { %v176_v22 = vmul.f32 %v1151_v21, %v172_v20 }
  0xc2   :  { %v178_v24 = vmul.f32 %v176_v22, %v1486_v5 }
  0xc4   :  { %v936_v26 = vpack.c.bf16 %v178_v24, %v177_v23 }
  0xc6   :  { %937 = vmatmul.msk.bf16.vlgmr.msra.gmra.mxu0 %vm1511_vm10, %v936_v26 }
 0x143   :  { %v255_v27 = vpop.f32.mrf.mxu0 }
 0x144   :  { %v260_v28 = vmul.f32 0.25, %v255_v27  ;;  %v1416_v27 = vmov 0.0  }
 0x146   :  { %v262_v29 = vsel %vm87_vm0, 0.0, %v260_v28  ;;  %v334_v28 = vsel %vm87_vm0, 1.0, %v1416_v27 }
 0x147   :  { %v264_v30 = vmul.f32 %v262_v29, %v262_v29 }
 0x149   :  { %266 = vadd.xlane.f32.xlu2 %v264_v30 }
 0x14b   :  { %v257_v31 = vpop.f32.mrf.mxu0 }
 0x14c   :  { %v261_v32 = vmul.f32 0.25, %v257_v31 }
 0x14e   :  { %v1521_v2 = vsel %vm87_vm0, 0.0, %v261_v32 }
 0x14f   :  { %v265_v5 = vmul.f32 %v1521_v2, %v1521_v2 }
 0x151   :  { %268 = vadd.xlane.f32.xlu2 %v265_v5 }
 0x1bc   :  { %v267_v33 = vpop.xlane.xlu2 %266 }
 0x1bd   :  { %v270_v34 = vmax.f32 %v267_v33, 1e-07 }
 0x1bf   :  { %1152 = vrsqrt.f32 %v270_v34  ;;  %vm279_vm11 = vcmp.eq.f32.partialorder %v270_v34, inf  ;;  %v282_v47 = vand.u32 2147483648, %v270_v34  ;;  %vm281_vm12 = vcmp.eq.f32.partialorder %v270_v34, 0.0 }
 0x1c4   :  { %v269_v35 = vpop.xlane.xlu2 %268 }
 0x1c5   :  { %v1153_v36 = vpop.eup %1152  ;;  %v271_v37 = vmax.f32 %v269_v35, 1e-07 }
 0x1c6   :  { %v273_v38 = vmul.f32 %v1153_v36, %v270_v34 }
 0x1c7   :  { %1154 = vrsqrt.f32 %v271_v37  ;;  %vm291_vm13 = vcmp.eq.f32.partialorder %v271_v37, inf  ;;  %v294_v56 = vand.u32 2147483648, %v271_v37  ;;  %vm293_vm14 = vcmp.eq.f32.partialorder %v271_v37, 0.0 }
 0x1c8   :  { %v274_v39 = vmul.f32 %v1153_v36, %v273_v38 }
 0x1ca   :  { %v275_v40 = vmul.f32 0.5, %v274_v39 }
 0x1cc   :  { %v276_v41 = vsub.f32 1.5, %v275_v40 }
 0x1cd   :  { %v1155_v42 = vpop.eup %1154 }
 0x1ce   :  { %v285_v43 = vmul.f32 %v1155_v42, %v271_v37  ;;  %v277_v44 = vmul.f32 %v1153_v36, %v276_v41 }
 0x1d0   :  { %v286_v45 = vmul.f32 %v1155_v42, %v285_v43  ;;  %v278_v46 = vmul.f32 %v277_v44, %v270_v34 }
 0x1d2   :  { %v287_v48 = vmul.f32 0.5, %v286_v45  ;;  %v280_v49 = vsel %vm279_vm11, %v270_v34, %v278_v46 }
 0x1d3   :  { %v283_v50 = vsel %vm281_vm12, %v282_v47, %v280_v49 }
 0x1d4   :  { %v288_v51 = vsub.f32 1.5, %v287_v48  ;;  %v296_v52 = vmin.f32 %v283_v50, 32.0 }
 0x1d6   :  { %v298_v53 = vmul.f32 1.442695, %v296_v52  ;;  %v289_v54 = vmul.f32 %v1155_v42, %v288_v51 }
 0x1d8   :  { %1156 = vpow2.f32 %v298_v53  ;;  %v290_v55 = vmul.f32 %v289_v54, %v271_v37 }
 0x1da   :  { %v292_v57 = vsel %vm291_vm13, %v271_v37, %v290_v55 }
 0x1db   :  { %v295_v58 = vsel %vm293_vm14, %v294_v56, %v292_v57 }
 0x1dc   :  { %v297_v59 = vmin.f32 %v295_v58, 32.0 }
 0x1de   :  { %v1157_v60 = vpop.eup %1156  ;;  %v300_v61 = vmul.f32 1.442695, %v297_v59 }
 0x1df   :  { %1158 = vrcp.f32 %v1157_v60 }
 0x1e0   :  { %1160 = vpow2.f32 %v300_v61 }
 0x1e1   :  { %1162 = vrcp.f32 %v283_v50 }
 0x1e5   :  { %v1159_v62 = vpop.eup %1158 }
 0x1e6   :  { %v1161_v0 = vpop.eup %1160  ;;  %v308_v3 = vsub.f32 %v1157_v60, %v1159_v62  ;;  %v304_v4 = vadd.f32 %v1159_v62, %v1157_v60 }
 0x1e7   :  { %1164 = vrcp.f32 %v1161_v0  ;;  %v1163_v8 = vpop.eup %1162 }
 0x1e8   :  { %v310_v6 = vmul.f32 0.5, %v308_v3  ;;  %1166 = vrcp.f32 %v295_v58  ;;  %v1530_v11 = vmul.f32 0.5, %v304_v4 }
 0x1ea   :  { %v314_v9 = vmul.f32 %v1163_v8, %v310_v6  ;;  %v328_v26 = vadd.f32 1.0, %v1530_v11 }
 0x1ec   :  { %v316_v12 = vmul.f32 %v314_v9, %v262_v29  ;;  %1168 = vrcp.f32 %v328_v26 }
 0x1ed   :  { %v1165_v13 = vpop.eup %1164 }
 0x1ee   :  { %v1535_v14 = vsel %vm87_vm0, %v1530_v11, %v316_v12  ;;  %v309_v15 = vsub.f32 %v1161_v0, %v1165_v13  ;;  %v305_v17 = vadd.f32 %v1165_v13, %v1161_v0  ;;  %v1167_v20 = vpop.eup %1166 }
 0x1ef   :  { %v322_v16 = vmul.f32 %v321_v10, %v1535_v14  ;;  %v335_v32 = vadd.f32 %v334_v28, %v1535_v14 }
 0x1f0   :  { %v311_v18 = vmul.f32 0.5, %v309_v15  ;;  %v1538_v21 = vmul.f32 0.5, %v305_v17 }
 0x1f1   :  { %324 = vadd.xlane.f32.xlu0 %v322_v16 }
 0x1f2   :  { %v315_v19 = vmul.f32 %v1167_v20, %v311_v18  ;;  %v329_v29 = vadd.f32 1.0, %v1538_v21  ;;  %v1169_v30 = vpop.eup %1168 }
 0x1f4   :  { %v317_v22 = vmul.f32 %v315_v19, %v1521_v2  ;;  %1170 = vrcp.f32 %v329_v29 }
 0x1f6   :  { %v1544_v23 = vsel %vm87_vm0, %v1538_v21, %v317_v22 }
 0x1f7   :  { %v323_v24 = vmul.f32 %v321_v10, %v1544_v23  ;;  %v336_v37 = vadd.f32 %v334_v28, %v1544_v23 }
 0x1f9   :  { %326 = vadd.xlane.f32.xlu1 %v323_v24 }
 0x1fa   :  { %v1171_v35 = vpop.eup %1170 }
 0x264   :  { %v325_v31 = vpop.xlane.xlu0 %324 }
 0x265   :  { %v332_v2 = vmul.f32 %v1169_v30, %v325_v31 }
 0x267   :  { %v337_v5 = vmul.f32 %v335_v32, %v332_v2  ;;  %v341_v41 = vmul.f32 %v332_v2, %v328_v26 }
 0x269   :  { %v1552_v33 = vadd.f32 %v337_v5, %v321_v10  ;;  %v349_v42 = vmul.f32 2.0, %v341_v41 }
 0x26b   :  { %v343_v34 = vmul.f32 %v1552_v33, %v1552_v33  ;;  %v351_v44 = vmul.f32 %v349_v42, %v341_v41 }
 0x26c   :  { %v327_v36 = vpop.xlane.xlu1 %326 }
 0x26d   :  { %v333_v1 = vmul.f32 %v1171_v35, %v327_v36  ;;  %345 = vadd.xlane.f32.xlu2 %v343_v34 }
 0x26f   :  { %v338_v38 = vmul.f32 %v336_v37, %v333_v1  ;;  %v1561_v43 = vmul.f32 %v333_v1, %v329_v29 }
 0x271   :  { %v1557_v39 = vadd.f32 %v338_v38, %v321_v10  ;;  %v350_v48 = vmul.f32 2.0, %v1561_v43 }
 0x273   :  { %v344_v40 = vmul.f32 %v1557_v39, %v1557_v39  ;;  %v352_v49 = vmul.f32 %v350_v48, %v1561_v43 }
 0x275   :  { %347 = vadd.xlane.f32.xlu0 %v344_v40 }
 0x2e0   :  { %v346_v45 = vpop.xlane.xlu2 %345 }
 0x2e1   :  { %v353_v46 = vsub.f32 %v346_v45, %v351_v44 }
 0x2e3   :  { %v355_v47 = vmax.f32 %v353_v46, 1e-07 }
 0x2e5   :  { %1172 = vrsqrt.f32 %v355_v47  ;;  %vm364_vm15 = vcmp.eq.f32.partialorder %v355_v47, inf  ;;  %v367_v0 = vand.u32 2147483648, %v355_v47  ;;  %vm366_vm0 = vcmp.eq.f32.partialorder %v355_v47, 0.0 }
 0x2e8   :  { %v348_v50 = vpop.xlane.xlu0 %347 }
 0x2e9   :  { %v354_v51 = vsub.f32 %v348_v50, %v352_v49 }
 0x2eb   :  { %v1173_v52 = vpop.eup %1172  ;;  %v356_v53 = vmax.f32 %v354_v51, 1e-07 }
 0x2ec   :  { %v358_v54 = vmul.f32 %v1173_v52, %v355_v47 }
 0x2ed   :  { %1174 = vrsqrt.f32 %v356_v53  ;;  %vm376_vm1 = vcmp.eq.f32.partialorder %v356_v53, inf  ;;  %v379_v13 = vand.u32 2147483648, %v356_v53  ;;  %vm378_vm2 = vcmp.eq.f32.partialorder %v356_v53, 0.0 }
 0x2ee   :  { %v359_v55 = vmul.f32 %v1173_v52, %v358_v54  ;;  %v1106_v54 = vld [vmem:[#allocation7 + $0x78] sm:$0xff] }
 0x2ef   :  { %644 = vmatpush.bf16.msra.mxu2 %v1106_v54 }
 0x2f0   :  { %v360_v56 = vmul.f32 0.5, %v359_v55  ;;  %v1114_v55 = vld [vmem:[#allocation7 + $0xb8] sm:$0xff] }
 0x2f1   :  { %726 = vmatpush.bf16.msra.mxu3 %v1114_v55 }
 0x2f2   :  { %v361_v57 = vsub.f32 1.5, %v360_v56  ;;  %v1097_v56 = vld [vmem:[#allocation7 + $0x30] sm:$0xff] }
 0x2f3   :  { %v1175_v58 = vpop.eup %1174 }
 0x2f4   :  { %v370_v59 = vmul.f32 %v1175_v58, %v356_v53  ;;  %v362_v60 = vmul.f32 %v1173_v52, %v361_v57  ;;  %v1105_v57 = vld [vmem:[#allocation7 + $0x70] sm:$0xff] }
 0x2f5   :  { %645 = vmatpush.bf16.msra.mxu2 %v1105_v57 }
 0x2f6   :  { %v371_v61 = vmul.f32 %v1175_v58, %v370_v59  ;;  %v363_v62 = vmul.f32 %v362_v60, %v355_v47  ;;  %v1096_v59 = vld [vmem:[#allocation7 + $0x28] sm:$0xff] }
 0x2f7   :  { %v1104_v60 = vld [vmem:[#allocation7 + $0x68] sm:$0xff] }
 0x2f8   :  { %v372_v3 = vmul.f32 0.5, %v371_v61  ;;  %v365_v4 = vsel %vm364_vm15, %v355_v47, %v363_v62  ;;  %v1112_v61 = vld [vmem:[#allocation7 + $0xa8] sm:$0xff] }
 0x2f9   :  { %v368_v6 = vsel %vm366_vm0, %v367_v0, %v365_v4  ;;  %646 = vmatpush.bf16.msra.mxu2 %v1104_v60  ;;  %v1103_v4 = vld [vmem:[#allocation7 + $0x60] sm:$0xff] }
 0x2fa   :  { %v373_v7 = vsub.f32 1.5, %v372_v3  ;;  %v381_v8 = vmin.f32 %v368_v6, 32.0  ;;  %v1095_v3 = vld [vmem:[#allocation7 + $0x20] sm:$0xff] }
 0x2fc   :  { %v383_v9 = vmul.f32 1.442695, %v381_v8  ;;  %v374_v10 = vmul.f32 %v1175_v58, %v373_v7  ;;  %v1113_v58 = vld [vmem:[#allocation7 + $0xb0] sm:$0xff]  ;;  %v1111_v7 = vld [vmem:[#allocation7 + $0xa0] sm:$0xff] }
 0x2fd   :  { %727 = vmatpush.bf16.msra.mxu3 %v1113_v58  ;;  %647 = vmatpush.bf16.msra.mxu2 %v1103_v4 }
 0x2fe   :  { %1176 = vpow2.f32 %v383_v9  ;;  %v375_v12 = vmul.f32 %v374_v10, %v356_v53  ;;  %v1094_v9 = vld [vmem:[#allocation7 + $0x18] sm:$0xff] }
 0x2ff   :  { %v1102_v10 = vld [vmem:[#allocation7 + $0x58] sm:$0xff] }
 0x300   :  { %v377_v15 = vsel %vm376_vm1, %v356_v53, %v375_v12  ;;  %v1098_v53 = vld [vmem:[#allocation7 + $0x38] sm:$0xff] }
 0x301   :  { %v380_v16 = vsel %vm378_vm2, %v379_v13, %v377_v15  ;;  %562 = vmatpush.bf16.msra.mxu1 %v1098_v53  ;;  %728 = vmatpush.bf16.msra.mxu3 %v1112_v61  ;;  %v1110_v13 = vld [vmem:[#allocation7 + $0x98] sm:$0xff]  ;;  %v1120_v61 = vld [vmem:[#allocation7 + $0xe8] sm:$0xff] }
 0x302   :  { %v382_v17 = vmin.f32 %v380_v16, 32.0  ;;  %648 = vmatpush.bf16.msra.mxu2 %v1102_v10 }
 0x304   :  { %v1177_v18 = vpop.eup %1176  ;;  %v385_v20 = vmul.f32 1.442695, %v382_v17 }
 0x305   :  { %1178 = vrcp.f32 %v1177_v18  ;;  %563 = vmatpush.bf16.msra.mxu1 %v1097_v56  ;;  %729 = vmatpush.bf16.msra.mxu3 %v1111_v7 }
 0x306   :  { %1180 = vpow2.f32 %v385_v20  ;;  %v1093_v20 = vld [vmem:[#allocation7 + $0x10] sm:$0xff] }
 0x307   :  { %1182 = vrcp.f32 %v368_v6 }
 0x309   :  { %564 = vmatpush.bf16.msra.mxu1 %v1096_v59  ;;  %730 = vmatpush.bf16.msra.mxu3 %v1110_v13 }
 0x30b   :  { %v1179_v19 = vpop.eup %1178 }
 0x30c   :  { %v1181_v22 = vpop.eup %1180  ;;  %v389_v24 = vadd.f32 %v1179_v19, %v1177_v18  ;;  %v393_v26 = vsub.f32 %v1177_v18, %v1179_v19  ;;  %v1101_v19 = vld [vmem:[#allocation7 + $0x50] sm:$0xff] }
 0x30d   :  { %1184 = vrcp.f32 %v1181_v22  ;;  %v1183_v29 = vpop.eup %1182  ;;  %565 = vmatpush.bf16.msra.mxu1 %v1095_v3  ;;  %649 = vmatpush.bf16.msra.mxu2 %v1101_v19 }
 0x30e   :  { %v391_v27 = vmul.f32 0.5, %v389_v24  ;;  %v395_v28 = vmul.f32 0.5, %v393_v26  ;;  %1186 = vrcp.f32 %v380_v16  ;;  %v1109_v24 = vld [vmem:[#allocation7 + $0x90] sm:$0xff] }
 0x30f   :  { %731 = vmatpush.bf16.msra.mxu3 %v1109_v24 }
 0x310   :  { %v399_v30 = vmul.f32 %v1183_v29, %v395_v28  ;;  %v401_v31 = vmul.f32 %v391_v27, %v1535_v14  ;;  %v407_v2 = vmul.f32 %v391_v27, %v1530_v11  ;;  %v1092_v28 = vld [vmem:[#allocation7 + $0x8] sm:$0xff] }
 0x311   :  { %566 = vmatpush.bf16.msra.mxu1 %v1094_v9  ;;  %v1100_v29 = vld [vmem:[#allocation7 + $0x48] sm:$0xff] }
 0x312   :  { %v403_v32 = vmul.f32 %v399_v30, %v1552_v33  ;;  %v409_v5 = vmul.f32 %v399_v30, %v341_v41  ;;  %650 = vmatpush.bf16.msra.mxu2 %v1100_v29  ;;  %v1116_v29 = vld [vmem:[#allocation7 + $0xc8] sm:$0xff] }
 0x313   :  { %v1185_v34 = vpop.eup %1184 }
 0x314   :  { %v1568_v35 = vadd.f32 %v403_v32, %v401_v31  ;;  %v390_v36 = vadd.f32 %v1185_v34, %v1181_v22  ;;  %v394_v37 = vsub.f32 %v1181_v22, %v1185_v34  ;;  %v411_v1 = vadd.f32 %v409_v5, %v407_v2  ;;  %v1187_v44 = vpop.eup %1186  ;;  %v1108_v31 = vld [vmem:[#allocation7 + $0x88] sm:$0xff] }
 0x315   :  { %567 = vmatpush.bf16.msra.mxu1 %v1093_v20  ;;  %732 = vmatpush.bf16.msra.mxu3 %v1108_v31 }
 0x316   :  { %v415_v38 = vmul.f32 %v1568_v35, %v1568_v35  ;;  %413 = vst [vmem:[#allocation10] sm:$0xff] %v1568_v35  ;;  %v392_v40 = vmul.f32 0.5, %v390_v36  ;;  %v396_v42 = vmul.f32 0.5, %v394_v37  ;;  %v1584_v49 = vmax.f32 %v411_v1, 1.0  ;;  %v1091_v36 = vld [vmem:[#allocation7] sm:$0xff] }
 0x317   :  { %v421_v15 = vmul.f32 %v411_v1, %v411_v1  ;;  %v1099_v37 = vld [vmem:[#allocation7 + $0x40] sm:$0xff] }
 0x318   :  { %417 = vadd.xlane.f32.xlu1 %v415_v38  ;;  %v400_v14 = vmul.f32 %v1187_v44, %v396_v42  ;;  %v402_v33 = vmul.f32 %v392_v40, %v1544_v23  ;;  %v408_v41 = vmul.f32 %v392_v40, %v1538_v21  ;;  %v453_v21 = vmul.f32 %v1584_v49, %v1584_v49  ;;  %v1107_v38 = vld [vmem:[#allocation7 + $0x80] sm:$0xff] }
 0x319   :  { %568 = vmatpush.bf16.msra.mxu1 %v1092_v28  ;;  %651 = vmatpush.bf16.msra.mxu2 %v1099_v37  ;;  %v1117_v28 = vld [vmem:[#allocation7 + $0xd0] sm:$0xff] }
 0x31a   :  { %v404_v11 = vmul.f32 %v400_v14, %v1557_v39  ;;  %v410_v45 = vmul.f32 %v400_v14, %v1561_v43  ;;  %v938_v43 = vadd.f32 -1.0, %v453_v21  ;;  %733 = vmatpush.bf16.msra.mxu3 %v1107_v38 }
 0x31c   :  { %v1577_v46 = vadd.f32 %v404_v11, %v402_v33  ;;  %v1579_v47 = vadd.f32 %v410_v45, %v408_v41  ;;  %v1593_v51 = vmax.f32 %v938_v43, 0.0 }
 0x31d   :  { %569 = vmatpush.bf16.msra.mxu1 %v1091_v36 }
 0x31e   :  { %v416_v48 = vmul.f32 %v1577_v46, %v1577_v46  ;;  %414 = vst [vmem:[#allocation10 + $0x8] sm:$0xff] %v1577_v46  ;;  %v1587_v23 = vmax.f32 %v1579_v47, 1.0  ;;  %1188 = vrsqrt.f32 %v1593_v51  ;;  %v422_v32 = vmul.f32 %v1579_v47, %v1579_v47  ;;  %v1122_v47 = vld [vmem:[#allocation7 + $0xf8] sm:$0xff] }
 0x31f   :  { %vm466_vm3 = vcmp.eq.f32.partialorder %v1593_v51, inf  ;;  %809 = vmatpush.bf16.msrb.mxu0 %v1122_v47  ;;  %vm468_vm5 = vcmp.eq.f32.partialorder %v1593_v51, 0.0  ;;  %837 = dma.vmem_to_hbm [thread:$0]  %s830_s30, 256, %s832_s28, [#allocation4], %s1412_s13, %s1412_s13, %s1413_s14  }
 0x320   :  { %419 = vadd.xlane.f32.xlu2 %v416_v48  ;;  %v454_v39 = vmul.f32 %v1587_v23, %v1587_v23 }
 0x322   :  { %v939_v50 = vadd.f32 -1.0, %v454_v39  ;;  %v1121_v39 = vld [vmem:[#allocation7 + $0xf0] sm:$0xff] }
 0x323   :  { %810 = vmatpush.bf16.msrb.mxu0 %v1121_v39 }
 0x324   :  { %v1595_v52 = vmax.f32 %v939_v50, 0.0  ;;  %v1189_v62 = vpop.eup %1188  ;;  %v469_v50 = vand.u32 2147483648, %v1593_v51 }
 0x325   :  { %v460_v6 = vmul.f32 %v1189_v62, %v1593_v51 }
 0x326   :  { %1190 = vrsqrt.f32 %v1595_v52  ;;  %vm478_vm4 = vcmp.eq.f32.partialorder %v1595_v52, inf  ;;  %v481_v54 = vand.u32 2147483648, %v1595_v52  ;;  %vm480_vm6 = vcmp.eq.f32.partialorder %v1595_v52, 0.0 }
 0x327   :  { %v461_v12 = vmul.f32 %v1189_v62, %v460_v6  ;;  %811 = vmatpush.bf16.msrb.mxu0 %v1120_v61 }
 0x329   :  { %v462_v22 = vmul.f32 0.5, %v461_v12 }
 0x32b   :  { %v463_v30 = vsub.f32 1.5, %v462_v22 }
 0x32c   :  { %v1191_v0 = vpop.eup %1190 }
 0x32d   :  { %v472_v8 = vmul.f32 %v1191_v0, %v1595_v52  ;;  %v464_v1 = vmul.f32 %v1189_v62, %v463_v30  ;;  %v595_v30 = vperm.slane %v1525_v63, 3 }
 0x32f   :  { %v473_v16 = vmul.f32 %v1191_v0, %v472_v8  ;;  %v465_v33 = vmul.f32 %v464_v1, %v1593_v51 }
 0x331   :  { %v474_v27 = vmul.f32 0.5, %v473_v16  ;;  %v467_v48 = vsel %vm466_vm3, %v1593_v51, %v465_v33 }
 0x332   :  { %v470_v57 = vsel %vm468_vm5, %v469_v50, %v467_v48 }
 0x333   :  { %v475_v2 = vsub.f32 1.5, %v474_v27  ;;  %v483_v62 = vadd.f32 %v470_v57, %v1584_v49  ;;  %v1118_v27 = vld [vmem:[#allocation7 + $0xd8] sm:$0xff] }
 0x335   :  { %v476_v42 = vmul.f32 %v1191_v0, %v475_v2 }
 0x337   :  { %v477_v41 = vmul.f32 %v476_v42, %v1595_v52 }
 0x339   :  { %v479_v53 = vsel %vm478_vm4, %v1595_v52, %v477_v41 }
 0x33a   :  { %v482_v58 = vsel %vm480_vm6, %v481_v54, %v479_v53 }
 0x33b   :  { %v484_v3 = vadd.f32 %v482_v58, %v1587_v23 }
 0x38b   :  { %v418_v17 = vpop.xlane.xlu1 %417 }
 0x38c   :  { %v423_v18 = vsub.f32 %v418_v17, %v421_v15 }
 0x38e   :  { %v1601_v26 = vmax.f32 %v423_v18, 1e-07 }
 0x390   :  { %1192 = vrsqrt.f32 %v1601_v26  ;;  %vm434_vm7 = vcmp.eq.f32.partialorder %v1601_v26, inf  ;;  %v437_v4 = vand.u32 2147483648, %v1601_v26  ;;  %vm436_vm8 = vcmp.eq.f32.partialorder %v1601_v26, 0.0 }
 0x393   :  { %v420_v5 = vpop.xlane.xlu2 %419 }
 0x394   :  { %v424_v34 = vsub.f32 %v420_v5, %v422_v32 }
 0x396   :  { %v1193_v40 = vpop.eup %1192  ;;  %v426_v44 = vmax.f32 %v424_v34, 1e-07 }
 0x397   :  { %v428_v14 = vmul.f32 %v1193_v40, %v1601_v26 }
 0x398   :  { %1194 = vrsqrt.f32 %v426_v44  ;;  %vm446_vm9 = vcmp.eq.f32.partialorder %v426_v44, inf  ;;  %v449_v9 = vand.u32 2147483648, %v426_v44  ;;  %vm448_vm11 = vcmp.eq.f32.partialorder %v426_v44, 0.0 }
 0x399   :  { %v429_v11 = vmul.f32 %v1193_v40, %v428_v14  ;;  %1196 = vlog2.f32 %v483_v62  ;;  %v760_v14 = vperm.slane %v1525_v63, 2 }
 0x39a   :  { %1198 = vlog2.f32 %v484_v3 }
 0x39b   :  { %v430_v45 = vmul.f32 0.5, %v429_v11 }
 0x39d   :  { %v431_v21 = vsub.f32 1.5, %v430_v45 }
 0x39e   :  { %v1195_v43 = vpop.eup %1194 }
 0x39f   :  { %v440_v55 = vmul.f32 %v1195_v43, %v426_v44  ;;  %v432_v56 = vmul.f32 %v1193_v40, %v431_v21  ;;  %v1197_v12 = vpop.eup %1196 }
 0x3a0   :  { %v1199_v23 = vpop.eup %1198  ;;  %v486_v15 = vmul.f32 0.6931472, %v1197_v12 }
 0x3a1   :  { %v433_v59 = vmul.f32 %v432_v56, %v1601_v26  ;;  %v441_v60 = vmul.f32 %v1195_v43, %v440_v55  ;;  %v488_v16 = vmul.f32 0.6931472, %v1199_v23 }
 0x3a3   :  { %v435_v0 = vsel %vm434_vm7, %v1601_v26, %v433_v59  ;;  %v442_v51 = vmul.f32 0.5, %v441_v60  ;;  %v1119_v26 = vld [vmem:[#allocation7 + $0xe0] sm:$0xff] }
 0x3a4   :  { %v438_v6 = vsel %vm436_vm8, %v437_v4, %v435_v0  ;;  %812 = vmatpush.bf16.msrb.mxu0 %v1119_v26 }
 0x3a5   :  { %v443_v52 = vsub.f32 1.5, %v442_v51  ;;  %1200 = vrcp.f32 %v438_v6 }
 0x3a7   :  { %v444_v7 = vmul.f32 %v1195_v43, %v443_v52 }
 0x3a8   :  { %813 = vmatpush.bf16.msrb.mxu0 %v1118_v27 }
 0x3a9   :  { %v445_v8 = vmul.f32 %v444_v7, %v426_v44 }
 0x3ab   :  { %v447_v49 = vsel %vm446_vm9, %v426_v44, %v445_v8  ;;  %v1201_v13 = vpop.eup %1200 }
 0x3ac   :  { %v450_v10 = vsel %vm448_vm11, %v449_v9, %v447_v49  ;;  %v491_v17 = vmul.f32 %v1201_v13, %v486_v15  ;;  %814 = vmatpush.bf16.msrb.mxu0 %v1117_v28 }
 0x3ad   :  { %1202 = vrcp.f32 %v450_v10 }
 0x3ae   :  { %v493_v19 = vmul.f32 %v491_v17, %v1568_v35  ;;  %v1115_v35 = vld [vmem:[#allocation7 + $0xc0] sm:$0xff] }
 0x3b0   :  { %815 = vmatpush.bf16.msrb.mxu0 %v1116_v29 }
 0x3b3   :  { %v1203_v18 = vpop.eup %1202 }
 0x3b4   :  { %v492_v20 = vmul.f32 %v1203_v18, %v488_v16  ;;  %816 = vmatpush.bf16.msrb.mxu0 %v1115_v35 }
 0x3b6   :  { %v494_v22 = vmul.f32 %v492_v20, %v1577_v46 }
 0x3b8   :  { %v975_v24 = vpack.c.bf16 %v494_v22, %v493_v19 }
 0x3ba   :  { %976 = vmatmul.msk.bf16.vlgmr.msra.gmra.mxu1 %vm1511_vm10, %v975_v24  ;;  %1013 = vmatmul.msk.bf16.vlgmr.msra.gmra.mxu2 %vm1511_vm10, %v975_v24 }
 0x3bb   :  { %1050 = vmatmul.msk.bf16.vlgmr.msra.gmra.mxu3 %vm1511_vm10, %v975_v24 }
 0x437   :  { %v571_v46 = vpop.f32.mrf.mxu1 }
 0x438   :  { %576 = vst [vmem:[#allocation11] sm:$0xff] %v571_v46 }
 0x43d   :  { %v653_v31 = vpop.f32.mrf.mxu2 }
 0x43e   :  { %v654_v32 = vadd.f32 %v653_v31, %v595_v30  ;;  %v735_v2 = vpop.f32.mrf.mxu3 }
 0x43f   :  { %v573_v5 = vpop.f32.mrf.mxu1  ;;  %v736_v34 = vadd.f32 %v735_v2, %v677_v25 }
 0x440   :  { %658 = vst [vmem:[#allocation13] sm:$0xff] %v654_v32 }
 0x441   :  { %577 = vst [vmem:[#allocation11 + $0x8] sm:$0xff] %v573_v5  ;;  %v740_v40 = vmax.f32 %v736_v34, 0.0 }
 0x442   :  { %850 = dma.vmem_to_hbm [thread:$0]  %s843_s3, 256, %s845_s25, [#allocation12], %s1412_s13, %s1412_s13, %s1413_s14  }
 0x445   :  { %v655_v36 = vpop.f32.mrf.mxu2 }
 0x446   :  { %v656_v37 = vadd.f32 %v655_v36, %v595_v30  ;;  %v737_v1 = vpop.f32.mrf.mxu3 }
 0x447   :  { %v738_v38 = vadd.f32 %v737_v1, %v677_v25 }
 0x448   :  { %659 = vst [vmem:[#allocation13 + $0x8] sm:$0xff] %v656_v37 }
 0x449   :  { %v741_v42 = vmax.f32 %v738_v38, 0.0  ;;  %863 = dma.vmem_to_hbm [thread:$0]  %s856_s5, 256, %s858_s11, [#allocation12], %s1412_s13, %s1412_s13, %s1413_s14  }
 0x44b   :  { %v742_v44 = vpack.c.bf16 %v741_v42, %v740_v40 }
 0x44d   :  { %817 = vmatmul.bf16.vlgmr.msrb.gmra.mxu0 %v742_v44 }
 0x4ca   :  { %v818_v33 = vpop.f32.mrf.mxu0 }
 0x4cb   :  { %v819_v11 = vadd.f32 %v818_v33, %v760_v14 }
 0x4cd   :  { %823 = vst [vmem:[#allocation14] sm:$0xff] %v819_v11 }
 0x4d2   :  { %v820_v41 = vpop.f32.mrf.mxu0 }
 0x4d3   :  { %v821_v45 = vadd.f32 %v820_v41, %v760_v14 }
 0x4d5   :  { %824 = vst [vmem:[#allocation14 + $0x8] sm:$0xff] %v821_v45 }
 0x4d6   :  { %876 = dma.vmem_to_hbm [thread:$0]  %s869_s12, 256, %s871_s16, [#allocation15], %s1412_s13, %s1412_s13, %s1413_s14  }
 0x4d7   :  { %1402 = dma.done.wait [#allocation4], 256  }
 0x4d8   :  { %1403 = vsyncadd [#allocation4], 4294967040 }
 0x4d9   :  { %1404 = dma.done.wait [#allocation12], 512  }
 0x4da   :  { %1405 = vsyncadd [#allocation12], 4294966784 }
 0x4db   :  { %1406 = dma.done.wait [#allocation15], 256  }
 0x4dc   :  { %1407 = vsyncadd [#allocation15], 4294967040 }
 0x4dd   :  { %893 = vsyncpa [#allocation3], 1 }
 0x4de   :  { %894 = vsyncpa [#allocation6], 1 }
 0x4df   :  { %895 = vsyncpa [#allocation9], 1 }
 0x4e0   :  { %896 = vsyncpa [#allocation4], 1 }
 0x4e1   :  { %897 = vsyncpa [#allocation12], 1 }
 0x4e2   :  { %898 = vsyncpa [#allocation15], 1 }

</bundles_post_ra>
